<compile_context>
chip_gen: v7x
topology: tpu7x:2x2x1
jax: 0.10.0
libtpu: 0.0.40
codegen_flags: <defaults>
</compile_context>

<pallas_src>
import functools

import numpy as np
import jax
import jax.numpy as jnp
from jax.experimental import pallas as pl
from jax.experimental.pallas import tpu as pltpu

EPS = 1e-05

# Constants mirroring PossibleNumericalError in the original repo.
UNDERFLOW_LIMIT = 1e-38
OVERFLOW_D = 38.0
UNDERFLOW_D = -38.0
EXP_THRES = float(OVERFLOW_D * np.log(10.0))
LOGSOFTMAX_GAP = float(OVERFLOW_D - UNDERFLOW_D)

# loss-component indices produced by the kernel
L_LOG, L_LOG_SOFTMAX_PREV, L_EXP, L_LOGSOFTMAX, L_DIV_POS, L_DIV_NEG = range(6)
_NUM_LOSSES = 6


def _precond_kernel(m_total, tn, include_bounds, needs_mask,
                    center_ref, scale_ref, span_ref, *out_refs):
    """Blocks are (W, TN): sublane axis = original last dim W (LogSoftMax reduction axis),
    lane axis = a TN-wide slice of the flattened B*C*H axis. Partial losses go to a
    per-block (1, 8, 128) output so the grid axis can be 'parallel' (no serial state)."""
    if include_bounds:
        lb_ref, ub_ref, part_ref = out_refs
    else:
        (part_ref,) = out_refs

    i = pl.program_id(0)

    center = center_ref[...]
    r = scale_ref[...] * span_ref[...]
    lb = center - r
    ub = center + r
    if include_bounds:
        lb_ref[...] = lb.astype(lb_ref.dtype)
        ub_ref[...] = ub.astype(ub_ref.dtype)

    # Hoisted shared subexpressions (kept in vregs, reused below).
    neg_lb = -lb
    lb_le_ul = lb <= UNDERFLOW_LIMIT
    div_mask = lb_le_ul & (ub >= -UNDERFLOW_LIMIT)

    # LogSoftMax: amin over the ORIGINAL last axis (= sublane axis 0 here), whole per block.
    d = ub - jnp.min(lb, axis=0, keepdims=True)

    zero = jnp.zeros_like(lb)
    if needs_mask:
        # In-kernel tail masking (replaces jnp.pad of inputs / slicing of outputs).
        lane = jax.lax.broadcasted_iota(jnp.int32, lb.shape, 1)
        inb = lane < (m_total - i * tn)
        sel = lambda pred, val: jnp.where(pred & inb, val, zero)
        keep = lambda val: jnp.where(inb, val, zero)
    else:
        sel = lambda pred, val: jnp.where(pred, val, zero)
        keep = lambda val: val

    # Per-block scalar partial losses (one XLU sum per term; hides under DMA).
    s_log = jnp.sum(sel(lb_le_ul, neg_lb))
    s_sm = jnp.sum(keep(ub - lb))                  # == sum(ub) - sum(lb) after reduction
    s_exp = jnp.sum(sel(ub >= EXP_THRES, ub - EXP_THRES))
    s_lsm = jnp.sum(sel(d >= LOGSOFTMAX_GAP, d - LOGSOFTMAX_GAP))
    s_dp = jnp.sum(sel(div_mask, neg_lb))
    s_dn = jnp.sum(sel(div_mask, ub))

    # Pack the 6 scalars into one (8,128) vreg (row k broadcast with loss k) -> single vst.
    row = jax.lax.broadcasted_iota(jnp.int32, (8, 128), 0)
    tile = jnp.where(row == L_LOG, s_log, 0.0)
    tile = jnp.where(row == L_LOG_SOFTMAX_PREV, s_sm, tile)
    tile = jnp.where(row == L_EXP, s_exp, tile)
    tile = jnp.where(row == L_LOGSOFTMAX, s_lsm, tile)
    tile = jnp.where(row == L_DIV_POS, s_dp, tile)
    tile = jnp.where(row == L_DIV_NEG, s_dn, tile)
    part_ref[0] = tile.astype(part_ref.dtype)


def _vmem_capacity_bytes():
    try:
        return int(pltpu.get_tpu_info().vmem_capacity_bytes)
    except Exception:
        return 64 * 1024 * 1024  # conservative fallback (v7x per-TC VMEM)


def _plan_tiles(w, m, include_bounds, lane_tile=None):
    """Generation-aware lane tile + VMEM limit. Pipeline footprint is kept at ~1/4 of
    physical VMEM (v7x 64 MiB -> 16 MiB, v5e/v6e 128 MiB -> 32 MiB), so per-grid-step
    HBM traffic is multi-MB and the fixed per-step overhead is amortized."""
    cap = _vmem_capacity_bytes()
    budget = min(cap // 4, 32 * 1024 * 1024)
    vmem_limit = int(min(budget + 16 * 1024 * 1024, cap // 2 + 8 * 1024 * 1024))
    n_streams = 5 if include_bounds else 3          # f32 streams, double-buffered
    per_lane = n_streams * 2 * w * 4
    m128 = ((m + 127) // 128) * 128
    if lane_tile is None:
        tn = max(128, (budget // per_lane) // 128 * 128)
    else:
        assert lane_tile % 128 == 0, "lane_tile must be a multiple of 128"
        tn = lane_tile
    return int(min(tn, m128)), vmem_limit


def precond_forward(center_wm, scale_wm, span_wm, *, include_bounds=True,
                    bounds_dtype=None, lane_tile=None):
    """center/scale/span: (W, M) f32, lane axis = flattened B*C*H.
    Returns (lb, ub, losses[6]); lb/ub are None when include_bounds=False."""
    assert center_wm.shape == scale_wm.shape == span_wm.shape
    w, m = center_wm.shape
    bdtype = center_wm.dtype if bounds_dtype is None else bounds_dtype
    tn, vmem_limit = _plan_tiles(w, m, include_bounds, lane_tile)
    nb = -(-m // tn)
    needs_mask = (m % tn) != 0

    tile_spec = pl.BlockSpec((w, tn), lambda i: (0, i))
    part_spec = pl.BlockSpec((1, 8, 128), lambda i: (i, 0, 0))
    part_shape = jax.ShapeDtypeStruct((nb, 8, 128), jnp.float32)

    if include_bounds:
        out_shape = (jax.ShapeDtypeStruct((w, m), bdtype),
                     jax.ShapeDtypeStruct((w, m), bdtype),
                     part_shape)
        out_specs = (tile_spec, tile_spec, part_spec)
    else:
        out_shape = (part_shape,)
        out_specs = (part_spec,)

    n_streams = 5 if include_bounds else 3
    kernel = functools.partial(_precond_kernel, m, tn, include_bounds, needs_mask)

    outs = pl.pallas_call(
        kernel,
        grid=(nb,),
        out_shape=out_shape,
        in_specs=[tile_spec, tile_spec, tile_spec],
        out_specs=out_specs,
        compiler_params=pltpu.CompilerParams(
            # No serial state across blocks (per-block partial losses) -> parallel grid,
            # so v7x can shard the lane-tile axis across both TensorCores.
            dimension_semantics=("parallel",),
            vmem_limit_bytes=vmem_limit,
        ),
        cost_estimate=pl.CostEstimate(
            flops=int(30 * w * m),
            transcendentals=0,
            bytes_accessed=int(n_streams * w * m * 4 + nb * 8 * 128 * 4),
        ),
    )(center_wm, scale_wm, span_wm)

    if include_bounds:
        lb, ub, partials = outs
    else:
        (partials,) = outs
        lb = ub = None
    # Tiny host/XLA-side reduction of per-block partials (also pairwise-sums for precision).
    losses = jnp.sum(partials[:, :_NUM_LOSSES, 0], axis=0)
    return lb, ub, losses


class PrecondGenPallas:
    """Minimal JAX/Pallas re-implementation of PrecondGenModule's forward semantics
    for a single (non-list) input abstraction variable."""

    def __init__(self):
        self.centers = {}
        self.scales = {}
        self.spans = {}
        self.orig_shape = {}

    def construct(self, lb0, ub0, name):
        # deterministic "parameter init", matching PrecondGenModule.construct; parameters
        # are stored lane-dense as (W, B*C*H) so forward needs no per-call transpose.
        orig_shape = lb0.shape
        w = orig_shape[-1]
        lb2 = lb0.reshape(-1, w).astype(jnp.float32).T   # (W, M)
        ub2 = ub0.reshape(-1, w).astype(jnp.float32).T   # (W, M)
        center = (lb2 + ub2) * 0.5
        # device-side degenerate-interval check (no host sync)
        has_width = jnp.sum(ub2 - lb2) > EPS
        span = jnp.where(has_width, center - lb2, jnp.zeros_like(center))
        scale = jnp.where(has_width, jnp.ones_like(center), jnp.zeros_like(center))
        self.centers[name] = center
        self.scales[name] = scale
        self.spans[name] = span
        self.orig_shape[name] = orig_shape

    def forward(self, node, excep, div_branch='+', var_name="x", loss_only=False):
        if not isinstance(node, list):
            nodes, exceps = [node], [excep]
        else:
            nodes, exceps = node, excep

        lb, ub, losses = precond_forward(
            self.centers[var_name], self.scales[var_name], self.spans[var_name],
            include_bounds=not loss_only)

        loss = jnp.float32(0.0)
        for _, optype in zip(nodes, exceps):
            if optype in ('Log', 'Sqrt'):
                loss = loss + losses[L_LOG]
            elif optype == 'LogSoftmaxPrevSoftmax':
                loss = loss + losses[L_LOG_SOFTMAX_PREV]
            elif optype == 'Exp':
                loss = loss + losses[L_EXP]
            elif optype == 'LogSoftMax':
                loss = loss + losses[L_LOGSOFTMAX]
            elif optype == 'Div':
                # TODO(synk): the original selects the divisor node's abstraction via graph
                #             edges; here the single tracked variable is used.
                loss = loss + (losses[L_DIV_POS] if div_branch == '+'
                               else losses[L_DIV_NEG])
            else:
                raise Exception(f'excep type {optype} not supported yet')

        if loss_only:
            return loss, [], {}, losses

        orig_shape = self.orig_shape[var_name]
        # TODO(synk): for large M keep bounds lane-dense (W, M) end-to-end in the downstream
        #             abstract-interpretation consumer; back-transpose kept to match layout.
        abstracts = {var_name: (lb.T.reshape(orig_shape), ub.T.reshape(orig_shape))}
        errors = []  # TODO(synk): produced by model.forward (graph propagation) in the original module
        return loss, errors, abstracts, losses


def _reference_losses(center_mw, scale_mw, span_mw):
    """Pure-JAX reference in the original (M, W) layout, mirroring the PyTorch math."""
    lb = center_mw - scale_mw * span_mw
    ub = center_mw + scale_mw * span_mw
    z = jnp.zeros_like(lb)
    l0 = jnp.sum(jnp.where(lb <= UNDERFLOW_LIMIT, -lb, z))
    l1 = jnp.sum(ub) - jnp.sum(lb)
    l2 = jnp.sum(jnp.where(ub >= EXP_THRES, ub - EXP_THRES, z))
    d = ub - jnp.min(lb, axis=-1, keepdims=True)
    l3 = jnp.sum(jnp.where(d >= LOGSOFTMAX_GAP, d - LOGSOFTMAX_GAP, z))
    m = (lb <= UNDERFLOW_LIMIT) & (ub >= -UNDERFLOW_LIMIT)
    l4 = jnp.sum(jnp.where(m, -lb, z))
    l5 = jnp.sum(jnp.where(m, ub, z))
    return lb, ub, jnp.stack([l0, l1, l2, l3, l4, l5])


if __name__ == "__main__":
    key = jax.random.PRNGKey(0)
    k1, k2 = jax.random.split(key)

    # ---- main check: small NCHW abstraction, single lane tile --------------------------
    B, C, H, W = 2, 4, 16, 16
    x = jax.random.normal(k1, (B, C, H, W), dtype=jnp.float32)
    lb0, ub0 = x - 0.5, x + 0.5           # interval box around x from the "first run"

    module = PrecondGenPallas()
    module.construct(lb0, ub0, "x")
    loss, errors, abstracts, losses = module.forward(
        node=["node_exp", "node_log", "node_div"],
        excep=["Exp", "Log", "Div"],
        div_branch='+')
    loss = jax.block_until_ready(loss)

    c_mw = module.centers["x"].T
    s_mw = module.scales["x"].T
    p_mw = module.spans["x"].T
    lb_ref, ub_ref, losses_ref = _reference_losses(c_mw, s_mw, p_mw)
    lb_k, ub_k = abstracts["x"]
    assert lb_k.shape == (B, C, H, W) and ub_k.shape == (B, C, H, W)
    assert jnp.allclose(lb_k.reshape(lb_ref.shape), lb_ref, atol=1e-5)
    assert jnp.allclose(ub_k.reshape(ub_ref.shape), ub_ref, atol=1e-5)
    assert jnp.allclose(losses, losses_ref, rtol=1e-5, atol=1e-3)
    loss_expected = losses_ref[L_EXP] + losses_ref[L_LOG] + losses_ref[L_DIV_POS]
    assert jnp.allclose(loss, loss_expected, rtol=1e-5, atol=1e-3)

    # ---- edge-case check: non-divisible M -> multi-block grid with in-kernel tail mask,
    #      plus the loss-only variant used by optimizer-loop call sites --------------------
    B2, C2, H2, W2 = 2, 4, 47, 16          # M = 376 lanes; lane_tile=128 -> 3 blocks, masked tail
    y = jax.random.normal(k2, (B2, C2, H2, W2), dtype=jnp.float32)
    mod2 = PrecondGenPallas()
    mod2.construct(y - 0.25, y + 0.25, "y")
    c2, s2, p2 = mod2.centers["y"], mod2.scales["y"], mod2.spans["y"]

    lb2_k, ub2_k, losses2 = precond_forward(c2, s2, p2, include_bounds=True, lane_tile=128)
    _, _, losses2_lo = precond_forward(c2, s2, p2, include_bounds=False, lane_tile=128)
    lb2_k = jax.block_until_ready(lb2_k)

    lb2_ref, ub2_ref, losses2_ref = _reference_losses(c2.T, s2.T, p2.T)
    assert jnp.allclose(lb2_k.T, lb2_ref, atol=1e-5)
    assert jnp.allclose(ub2_k.T, ub2_ref, atol=1e-5)
    assert jnp.allclose(losses2, losses2_ref, rtol=1e-5, atol=1e-3)
    assert jnp.allclose(losses2_lo, losses2_ref, rtol=1e-5, atol=1e-3)

    print("KERNEL_OK")
</pallas_src>

<mosaic_0001>
module attributes {stable_mosaic.version = 11 : i64} {
  func.func @_precond_kernel(%arg0: i32, %arg1: memref<16x128xf32, #tpu.memory_space<vmem>>, %arg2: memref<16x128xf32, #tpu.memory_space<vmem>>, %arg3: memref<16x128xf32, #tpu.memory_space<vmem>>, %arg4: memref<16x128xf32, #tpu.memory_space<vmem>>, %arg5: memref<16x128xf32, #tpu.memory_space<vmem>>, %arg6: memref<1x8x128xf32, #tpu.memory_space<vmem>>) attributes {dimension_semantics = [#tpu.dimension_semantics<parallel>], iteration_bounds = array<i64: 1>, scalar_prefetch = 0 : i64, scratch_operands = 0 : i64, tpu.core_type = #tpu.core_type<tc>, window_params = [{transform_indices = @transform_0, window_bounds = array<i64: 16, 128>}, {transform_indices = @transform_1, window_bounds = array<i64: 16, 128>}, {transform_indices = @transform_2, window_bounds = array<i64: 16, 128>}, {transform_indices = @transform_3, window_bounds = array<i64: 16, 128>}, {transform_indices = @transform_4, window_bounds = array<i64: 16, 128>}, {transform_indices = @transform_5, window_bounds = array<i64: 1, 8, 128>}]} {
    %c0 = arith.constant 0 : index
    %c0_0 = arith.constant 0 : index
    %0 = vector.load %arg1[%c0, %c0_0] : memref<16x128xf32, #tpu.memory_space<vmem>>, vector<16x128xf32>
    %c0_1 = arith.constant 0 : index
    %c0_2 = arith.constant 0 : index
    %1 = vector.load %arg2[%c0_1, %c0_2] : memref<16x128xf32, #tpu.memory_space<vmem>>, vector<16x128xf32>
    %c0_3 = arith.constant 0 : index
    %c0_4 = arith.constant 0 : index
    %2 = vector.load %arg3[%c0_3, %c0_4] : memref<16x128xf32, #tpu.memory_space<vmem>>, vector<16x128xf32>
    %3 = arith.mulf %1, %2 : vector<16x128xf32>
    %4 = arith.subf %0, %3 : vector<16x128xf32>
    %5 = arith.addf %0, %3 : vector<16x128xf32>
    %c0_5 = arith.constant 0 : index
    %c0_6 = arith.constant 0 : index
    %6 = vector.load %arg4[%c0_5, %c0_6] : memref<16x128xf32, #tpu.memory_space<vmem>>, vector<16x128xf32>
    tpu.vector_store %arg4[%c0_5, %c0_6], %4 {strides = array<i32>} : memref<16x128xf32, #tpu.memory_space<vmem>>, vector<16x128xf32>,
    %c0_7 = arith.constant 0 : index
    %c0_8 = arith.constant 0 : index
    %7 = vector.load %arg5[%c0_7, %c0_8] : memref<16x128xf32, #tpu.memory_space<vmem>>, vector<16x128xf32>
    tpu.vector_store %arg5[%c0_7, %c0_8], %5 {strides = array<i32>} : memref<16x128xf32, #tpu.memory_space<vmem>>, vector<16x128xf32>,
    %cst = arith.constant 0.000000e+00 : f32
    %8 = vector.broadcast %cst : f32 to vector<16x128xf32>
    %9 = arith.subf %8, %4 : vector<16x128xf32>
    %cst_9 = arith.constant 9.99999935E-39 : f32
    %10 = vector.broadcast %cst_9 : f32 to vector<16x128xf32>
    %11 = arith.cmpf ole, %4, %10 : vector<16x128xf32>
    %cst_10 = arith.constant -9.99999935E-39 : f32
    %12 = vector.broadcast %cst_10 : f32 to vector<16x128xf32>
    %13 = arith.cmpf oge, %5, %12 : vector<16x128xf32>
    %14 = arith.andi %11, %13 : vector<16x128xi1>
    %cst_11 = arith.constant dense<0x7F800000> : vector<128xf32>
    %15 = vector.multi_reduction <minimumf>, %4, %cst_11 [0] : vector<16x128xf32> to vector<128xf32>
    %16 = vector.shape_cast %15 : vector<128xf32> to vector<1x128xf32>
    %17 = vector.broadcast %16 : vector<1x128xf32> to vector<16x128xf32>
    %18 = arith.subf %5, %17 : vector<16x128xf32>
    %cst_12 = arith.constant 0.000000e+00 : f32
    %19 = vector.broadcast %cst_12 : f32 to vector<16x128xf32>
    %20 = arith.select %11, %9, %19 : vector<16x128xi1>, vector<16x128xf32>
    %21 = vector.shape_cast %20 : vector<16x128xf32> to vector<1x16x128xf32>
    %cst_13 = arith.constant dense<0.000000e+00> : vector<1xf32>
    %22 = vector.multi_reduction <add>, %21, %cst_13 [1, 2] : vector<1x16x128xf32> to vector<1xf32>
    %23 = vector.shape_cast %22 : vector<1xf32> to vector<1x1x1xf32>
    %24 = vector.extract %23[0, 0, 0] : f32 from vector<1x1x1xf32>
    %25 = arith.subf %5, %4 : vector<16x128xf32>
    %26 = vector.shape_cast %25 : vector<16x128xf32> to vector<1x16x128xf32>
    %cst_14 = arith.constant dense<0.000000e+00> : vector<1xf32>
    %27 = vector.multi_reduction <add>, %26, %cst_14 [1, 2] : vector<1x16x128xf32> to vector<1xf32>
    %28 = vector.shape_cast %27 : vector<1xf32> to vector<1x1x1xf32>
    %29 = vector.extract %28[0, 0, 0] : f32 from vector<1x1x1xf32>
    %cst_15 = arith.constant 87.49823 : f32
    %30 = vector.broadcast %cst_15 : f32 to vector<16x128xf32>
    %31 = arith.cmpf oge, %5, %30 : vector<16x128xf32>
    %cst_16 = arith.constant 87.49823 : f32
    %32 = vector.broadcast %cst_16 : f32 to vector<16x128xf32>
    %33 = arith.subf %5, %32 : vector<16x128xf32>
    %34 = arith.select %31, %33, %19 : vector<16x128xi1>, vector<16x128xf32>
    %35 = vector.shape_cast %34 : vector<16x128xf32> to vector<1x16x128xf32>
    %cst_17 = arith.constant dense<0.000000e+00> : vector<1xf32>
    %36 = vector.multi_reduction <add>, %35, %cst_17 [1, 2] : vector<1x16x128xf32> to vector<1xf32>
    %37 = vector.shape_cast %36 : vector<1xf32> to vector<1x1x1xf32>
    %38 = vector.extract %37[0, 0, 0] : f32 from vector<1x1x1xf32>
    %cst_18 = arith.constant 7.600000e+01 : f32
    %39 = vector.broadcast %cst_18 : f32 to vector<16x128xf32>
    %40 = arith.cmpf oge, %18, %39 : vector<16x128xf32>
    %cst_19 = arith.constant 7.600000e+01 : f32
    %41 = vector.broadcast %cst_19 : f32 to vector<16x128xf32>
    %42 = arith.subf %18, %41 : vector<16x128xf32>
    %43 = arith.select %40, %42, %19 : vector<16x128xi1>, vector<16x128xf32>
    %44 = vector.shape_cast %43 : vector<16x128xf32> to vector<1x16x128xf32>
    %cst_20 = arith.constant dense<0.000000e+00> : vector<1xf32>
    %45 = vector.multi_reduction <add>, %44, %cst_20 [1, 2] : vector<1x16x128xf32> to vector<1xf32>
    %46 = vector.shape_cast %45 : vector<1xf32> to vector<1x1x1xf32>
    %47 = vector.extract %46[0, 0, 0] : f32 from vector<1x1x1xf32>
    %48 = arith.select %14, %9, %19 : vector<16x128xi1>, vector<16x128xf32>
    %49 = vector.shape_cast %48 : vector<16x128xf32> to vector<1x16x128xf32>
    %cst_21 = arith.constant dense<0.000000e+00> : vector<1xf32>
    %50 = vector.multi_reduction <add>, %49, %cst_21 [1, 2] : vector<1x16x128xf32> to vector<1xf32>
    %51 = vector.shape_cast %50 : vector<1xf32> to vector<1x1x1xf32>
    %52 = vector.extract %51[0, 0, 0] : f32 from vector<1x1x1xf32>
    %53 = arith.select %14, %5, %19 : vector<16x128xi1>, vector<16x128xf32>
    %54 = vector.shape_cast %53 : vector<16x128xf32> to vector<1x16x128xf32>
    %cst_22 = arith.constant dense<0.000000e+00> : vector<1xf32>
    %55 = vector.multi_reduction <add>, %54, %cst_22 [1, 2] : vector<1x16x128xf32> to vector<1xf32>
    %56 = vector.shape_cast %55 : vector<1xf32> to vector<1x1x1xf32>
    %57 = vector.extract %56[0, 0, 0] : f32 from vector<1x1x1xf32>
    %58 = tpu.iota {dimensions = array<i32: 0>} : vector<8x128xi32>
    %c0_i32 = arith.constant 0 : i32
    %59 = vector.broadcast %c0_i32 : i32 to vector<8x128xi32>
    %60 = arith.cmpi eq, %58, %59 : vector<8x128xi32>
    %cst_23 = arith.constant 0.000000e+00 : f32
    %61 = vector.broadcast %24 : f32 to vector<8x128xf32>
    %62 = vector.broadcast %cst_23 : f32 to vector<8x128xf32>
    %63 = arith.select %60, %61, %62 : vector<8x128xi1>, vector<8x128xf32>
    %c1_i32 = arith.constant 1 : i32
    %64 = vector.broadcast %c1_i32 : i32 to vector<8x128xi32>
    %65 = arith.cmpi eq, %58, %64 : vector<8x128xi32>
    %66 = vector.broadcast %29 : f32 to vector<8x128xf32>
    %67 = arith.select %65, %66, %63 : vector<8x128xi1>, vector<8x128xf32>
    %c2_i32 = arith.constant 2 : i32
    %68 = vector.broadcast %c2_i32 : i32 to vector<8x128xi32>
    %69 = arith.cmpi eq, %58, %68 : vector<8x128xi32>
    %70 = vector.broadcast %38 : f32 to vector<8x128xf32>
    %71 = arith.select %69, %70, %67 : vector<8x128xi1>, vector<8x128xf32>
    %c3_i32 = arith.constant 3 : i32
    %72 = vector.broadcast %c3_i32 : i32 to vector<8x128xi32>
    %73 = arith.cmpi eq, %58, %72 : vector<8x128xi32>
    %74 = vector.broadcast %47 : f32 to vector<8x128xf32>
    %75 = arith.select %73, %74, %71 : vector<8x128xi1>, vector<8x128xf32>
    %c4_i32 = arith.constant 4 : i32
    %76 = vector.broadcast %c4_i32 : i32 to vector<8x128xi32>
    %77 = arith.cmpi eq, %58, %76 : vector<8x128xi32>
    %78 = vector.broadcast %52 : f32 to vector<8x128xf32>
    %79 = arith.select %77, %78, %75 : vector<8x128xi1>, vector<8x128xf32>
    %c5_i32 = arith.constant 5 : i32
    %80 = vector.broadcast %c5_i32 : i32 to vector<8x128xi32>
    %81 = arith.cmpi eq, %58, %80 : vector<8x128xi32>
    %82 = vector.broadcast %57 : f32 to vector<8x128xf32>
    %83 = arith.select %81, %82, %79 : vector<8x128xi1>, vector<8x128xf32>
    %c0_24 = arith.constant 0 : index
    %c0_25 = arith.constant 0 : index
    %c0_26 = arith.constant 0 : index
    %84 = vector.load %arg6[%c0_24, %c0_25, %c0_26] : memref<1x8x128xf32, #tpu.memory_space<vmem>>, vector<1x8x128xf32>
    %85 = vector.shape_cast %84 : vector<1x8x128xf32> to vector<8x128xf32>
    %86 = vector.shape_cast %83 : vector<8x128xf32> to vector<1x8x128xf32>
    tpu.vector_store %arg6[%c0_24, %c0_25, %c0_26], %86 {strides = array<i32>} : memref<1x8x128xf32, #tpu.memory_space<vmem>>, vector<1x8x128xf32>,
    return
  }
  func.func @transform_0(%arg0: i32) -> (i32, i32) {
    %c0_i32 = arith.constant 0 : i32
    %c0_i32_0 = arith.constant 0 : i32
    return %c0_i32, %arg0 : i32, i32
  }
  func.func @transform_1(%arg0: i32) -> (i32, i32) {
    %c0_i32 = arith.constant 0 : i32
    %c0_i32_0 = arith.constant 0 : i32
    return %c0_i32, %arg0 : i32, i32
  }
  func.func @transform_2(%arg0: i32) -> (i32, i32) {
    %c0_i32 = arith.constant 0 : i32
    %c0_i32_0 = arith.constant 0 : i32
    return %c0_i32, %arg0 : i32, i32
  }
  func.func @transform_3(%arg0: i32) -> (i32, i32) {
    %c0_i32 = arith.constant 0 : i32
    %c0_i32_0 = arith.constant 0 : i32
    return %c0_i32, %arg0 : i32, i32
  }
  func.func @transform_4(%arg0: i32) -> (i32, i32) {
    %c0_i32 = arith.constant 0 : i32
    %c0_i32_0 = arith.constant 0 : i32
    return %c0_i32, %arg0 : i32, i32
  }
  func.func @transform_5(%arg0: i32) -> (i32, i32, i32) {
    %c0_i32 = arith.constant 0 : i32
    %c0_i32_0 = arith.constant 0 : i32
    %c0_i32_1 = arith.constant 0 : i32
    return %arg0, %c0_i32, %c0_i32_0 : i32, i32, i32
  }
}

</mosaic_0001>

<bundles_post_ra>
// kernel: tpu_custom_call.1
= control target key start
LH: loop header
LB: loop body
LE: loop exit
PB: predicated region body
PF: predicated region fallthrough
CT: control target
= control target key end

     0   :  { %11 = vsyncpa [#allocation3], 0  ;;  %s555_s0 = inlined_call_operand.hbm [shape: f32[16,128], index: 0, kind: input, shape index: {}]   ;;  %s556_s1 = inlined_call_operand.hbm [shape: f32[16,128], index: 1, kind: input, shape index: {}]   ;;  %s557_s2 = inlined_call_operand.hbm [shape: f32[16,128], index: 2, kind: input, shape index: {}]   ;;  %s558_s3 = inlined_call_operand.hbm [shape: f32[16,128], index: 3, kind: output, shape index: {0}]   ;;  %s559_s4 = inlined_call_operand.hbm [shape: f32[16,128], index: 4, kind: output, shape index: {1}]   ;;  %s560_s5 = inlined_call_operand.hbm [shape: f32[1,8,128], index: 5, kind: output, shape index: {2}]  }
   0x1   :  { %12 = vsyncpa [#allocation6], 0 }
   0x2   :  { %13 = vsyncpa [#allocation4], 0 }
   0x3   :  { %14 = vsyncpa [#allocation10], 0  ;;  %s405_s18 = smov [#allocation5]   ;;  %s406_s20 = smov [#allocation2]  }
   0x4   :  { %s32_s19 = sshll.u32 %s405_s18, 4  ;;  %s20_s21 = sshll.u32 %s406_s20, 4  ;;  %s33_s19 = int_to_ptr.vmem [resolvable:$true] %s32_s19  ;;  %s443_s21 = int_to_ptr.vmem [resolvable:$true] %s20_s21 }
   0x5   :  { %s265_s24 = scalar_lea.hbm %s556_s1, 256 }
   0x6   :  { %p266_p0 = scmp.ne.s32.totalorder %s556_s1, %s265_s24  ;;  %p269_p1 = scmp.lt.u32.totalorder %s265_s24, %s556_s1 }
   0x8   :  { %p271_p2 = pnand %p269_p1, %p266_p0 }
   0xa   :  { %274 = shalt.err (!%p271_p2)
}
   0xb   :  { %s275_s29 = scalar_lea.vmem %s33_s19, 256  ;;  %p280_p4 = scmp.lt.s32.totalorder %s33_s19, %s33_s19 }
   0xc   :  { %p276_p3 = scmp.ne.s32.totalorder %s33_s19, %s275_s29  ;;  %p281_p5 = scmp.lt.s32.totalorder %s275_s29, %s275_s29 }
   0xe   :  { %p282_p6 = por %p281_p5, %p280_p4 }
  0x10   :  { %p283_p7 = pnand %p282_p6, %p276_p3 }
  0x12   :  { %286 = shalt.err (!%p283_p7)
}
  0x13   :  { %s407_s30 = smov 128   ;;  %s408_s6 = smov 8  }
  0x14   :  { %38 = dma.hbm_to_vmem [thread:$0]  %s556_s1, 256, %s33_s19, [#allocation6], %s407_s30, %s407_s30, %s408_s6  }
  0x15   :  { %s287_s11 = scalar_lea.hbm %s555_s0, 256 }
  0x16   :  { %p288_p8 = scmp.ne.s32.totalorder %s555_s0, %s287_s11  ;;  %p291_p9 = scmp.lt.u32.totalorder %s287_s11, %s555_s0 }
  0x18   :  { %p293_p10 = pnand %p291_p9, %p288_p8 }
  0x1a   :  { %296 = shalt.err (!%p293_p10)
}
  0x1b   :  { %s297_s16 = scalar_lea.vmem %s443_s21, 256  ;;  %p302_p12 = scmp.lt.s32.totalorder %s443_s21, %s443_s21 }
  0x1c   :  { %p298_p11 = scmp.ne.s32.totalorder %s443_s21, %s297_s16  ;;  %p303_p13 = scmp.lt.s32.totalorder %s297_s16, %s297_s16 }
  0x1e   :  { %p304_p0 = por %p303_p13, %p302_p12 }
  0x20   :  { %p305_p1 = pnand %p304_p0, %p298_p11 }
  0x22   :  { %308 = shalt.err (!%p305_p1)
}
  0x23   :  { %26 = dma.hbm_to_vmem [thread:$0]  %s555_s0, 256, %s443_s21, [#allocation3], %s407_s30, %s407_s30, %s408_s6  }
  0x24   :  { %s409_s18 = smov [#allocation7]   ;;  %s309_s23 = scalar_lea.hbm %s557_s2, 256 }
  0x25   :  { %s44_s19 = sshll.u32 %s409_s18, 4  ;;  %p310_p2 = scmp.ne.s32.totalorder %s557_s2, %s309_s23  ;;  %s45_s19 = int_to_ptr.vmem [resolvable:$true] %s44_s19 }
  0x26   :  { %p313_p3 = scmp.lt.u32.totalorder %s309_s23, %s557_s2 }
  0x28   :  { %p315_p4 = pnand %p313_p3, %p310_p2 }
  0x2a   :  { %318 = shalt.err (!%p315_p4)
}
  0x2b   :  { %s319_s28 = scalar_lea.vmem %s45_s19, 256  ;;  %p324_p6 = scmp.lt.s32.totalorder %s45_s19, %s45_s19 }
  0x2c   :  { %p320_p5 = scmp.ne.s32.totalorder %s45_s19, %s319_s28  ;;  %p325_p7 = scmp.lt.s32.totalorder %s319_s28, %s319_s28 }
  0x2e   :  { %p326_p8 = por %p325_p7, %p324_p6 }
  0x30   :  { %p327_p9 = pnand %p326_p8, %p320_p5 }
  0x32   :  { %330 = shalt.err (!%p327_p9)
}
  0x33   :  { %50 = dma.hbm_to_vmem [thread:$0]  %s557_s2, 256, %s45_s19, [#allocation6], %s407_s30, %s407_s30, %s408_s6  }
  0x34   :  { %397 = dma.done.wait [#allocation3], 256  }
  0x35   :  { %398 = vsyncadd [#allocation3], 4294967040 }
  0x36   :  { %399 = dma.done.wait [#allocation6], 512  }
  0x37   :  { %400 = vsyncadd [#allocation6], 4294966784  ;;  %v60_v0 = vld [vmem:[#allocation2] sm:$0xff]  ;;  %v61_v1 = vld [vmem:[#allocation2 + $0x8] sm:$0xff]  ;;  %s410_s2 = smov [#allocation9]   ;;  %s411_s7 = smov [#allocation8]  }
  0x38   :  { %v62_v2 = vld [vmem:[#allocation5] sm:$0xff]  ;;  %v63_v3 = vld [vmem:[#allocation5 + $0x8] sm:$0xff]  ;;  %v64_v4 = vld [vmem:[#allocation7] sm:$0xff]  ;;  %s211_s29 = sshll.u32 %s410_s2, 4  ;;  %s199_s8 = sshll.u32 %s411_s7, 4  ;;  %s212_s29 = int_to_ptr.vmem [resolvable:$true] %s211_s29  ;;  %s200_s8 = int_to_ptr.vmem [resolvable:$true] %s199_s8 }
  0x39   :  { %v65_v5 = vld [vmem:[#allocation7 + $0x8] sm:$0xff]  ;;  %v66_v6 = vmul.f32 %v64_v4, %v62_v2  ;;  %s331_s9 = scalar_lea.vmem %s212_s29, 256  ;;  %p336_p11 = scmp.lt.s32.totalorder %s212_s29, %s212_s29 }
  0x3a   :  { %v67_v7 = vmul.f32 %v65_v5, %v63_v3  ;;  %p332_p10 = scmp.ne.s32.totalorder %s212_s29, %s331_s9  ;;  %p337_p12 = scmp.lt.s32.totalorder %s331_s9, %s331_s9 }
  0x3b   :  { %v68_v8 = vsub.f32 %v60_v0, %v66_v6  ;;  %v70_v10 = vadd.f32 %v66_v6, %v60_v0 }
  0x3c   :  { %v69_v9 = vsub.f32 %v61_v1, %v67_v7  ;;  %v71_v11 = vadd.f32 %v67_v7, %v61_v1  ;;  %p338_p13 = por %p337_p12, %p336_p11 }
  0x3d   :  { %v105_v12 = vsub.f32 %v70_v10, %v68_v8  ;;  %72 = vst [vmem:[#allocation8] sm:$0xff] %v68_v8  ;;  %74 = vst [vmem:[#allocation9] sm:$0xff] %v70_v10  ;;  %v76_v14 = vsub.f32 0.0, %v68_v8  ;;  %vm78_vm0 = vcmp.le.f32.partialorder %v68_v8, 1e-38 }
  0x3e   :  { %v106_v13 = vsub.f32 %v71_v11, %v69_v9  ;;  %73 = vst [vmem:[#allocation8 + $0x8] sm:$0xff] %v69_v9  ;;  %75 = vst [vmem:[#allocation9 + $0x8] sm:$0xff] %v71_v11  ;;  %v77_v15 = vsub.f32 0.0, %v69_v9  ;;  %vm79_vm1 = vcmp.le.f32.partialorder %v69_v9, 1e-38  ;;  %v84_v16 = vmin.f32 %v68_v8, %v69_v9  ;;  %p339_p0 = pnand %p338_p13, %p332_p10 }
  0x3f   :  { %vm117_vm2 = vcmp.ge.f32.partialorder %v70_v10, 87.49823  ;;  %v93_v18 = vsel %vm78_vm0, %v76_v14, 0.0  ;;  %vm118_vm3 = vcmp.ge.f32.partialorder %v71_v11, 87.49823 }
  0x40   :  { %v107_v17 = vadd.f32 %v106_v13, %v105_v12  ;;  %v94_v19 = vsel %vm79_vm1, %v77_v15, 0.0  ;;  %v241_v20 = vadd.f32 -87.49823, %v70_v10  ;;  %v242_v21 = vadd.f32 -87.49823, %v71_v11 }
  0x41   :  { %vm80_vm4 = vcmp.ge.f32.partialorder %v70_v10, -1e-38  ;;  %v95_v22 = vadd.f32 %v94_v19, %v93_v18  ;;  %vm81_vm5 = vcmp.ge.f32.partialorder %v71_v11, -1e-38  ;;  %v85_v24 = vrot.slane %v84_v16, 4 }
  0x42   :  { %108 = vadd.xlane.f32.xlu0 %v107_v17  ;;  %vm496_vm6 = vmand %vm78_vm0, %vm80_vm4  ;;  %v121_v25 = vsel %vm117_vm2, %v241_v20, 0.0  ;;  %v122_v26 = vsel %vm118_vm3, %v242_v21, 0.0 }
  0x43   :  { %vm501_vm7 = vmand %vm79_vm1, %vm81_vm5  ;;  %v149_v28 = vsel %vm496_vm6, %v76_v14, 0.0  ;;  %v123_v29 = vadd.f32 %v122_v26, %v121_v25  ;;  %v86_v31 = vmin.f32 %v84_v16, %v85_v24  ;;  %v161_v43 = vsel %vm496_vm6, %v70_v10, 0.0 }
  0x44   :  { %v150_v30 = vsel %vm501_vm7, %v77_v15, 0.0  ;;  %v162_v44 = vsel %vm501_vm7, %v71_v11, 0.0 }
  0x45   :  { %124 = vadd.xlane.f32.xlu1 %v123_v29  ;;  %v151_v32 = vadd.f32 %v150_v30, %v149_v28  ;;  %v87_v33 = vrot.slane %v86_v31, 2  ;;  %v163_v46 = vadd.f32 %v162_v44, %v161_v43 }
  0x46   :  { %96 = vadd.xlane.f32.xlu0 %v95_v22 }
  0x47   :  { %v88_v34 = vmin.f32 %v86_v31, %v87_v33 }
  0x49   :  { %v89_v35 = vrot.slane %v88_v34, 1 }
  0x4a   :  { %152 = vadd.xlane.f32.xlu0 %v151_v32 }
  0x4b   :  { %v90_v36 = vmin.f32 %v88_v34, %v89_v35 }
  0x4d   :  { %v91_v37 = vsub.f32 %v70_v10, %v90_v36  ;;  %v92_v38 = vsub.f32 %v71_v11, %v90_v36 }
  0x4f   :  { %vm133_vm8 = vcmp.ge.f32.partialorder %v91_v37, 76.0  ;;  %vm134_vm9 = vcmp.ge.f32.partialorder %v92_v38, 76.0  ;;  %v243_v39 = vadd.f32 -76.0, %v91_v37  ;;  %v244_v40 = vadd.f32 -76.0, %v92_v38 }
  0x51   :  { %v137_v41 = vsel %vm133_vm8, %v243_v39, 0.0  ;;  %v138_v42 = vsel %vm134_vm9, %v244_v40, 0.0 }
  0x52   :  { %v139_v45 = vadd.f32 %v138_v42, %v137_v41 }
  0x54   :  { %140 = vadd.xlane.f32.xlu1 %v139_v45 }
  0x58   :  { %164 = vadd.xlane.f32.xlu1 %v163_v46 }
  0x59   :  { %342 = shalt.err (!%p339_p0)
}
  0x5a   :  { %s343_s12 = scalar_lea.hbm %s559_s4, 256 }
  0x5b   :  { %p344_p1 = scmp.ne.s32.totalorder %s559_s4, %s343_s12  ;;  %p347_p2 = scmp.lt.u32.totalorder %s343_s12, %s559_s4 }
  0x5d   :  { %p349_p3 = pnand %p347_p2, %p344_p1 }
  0x5f   :  { %352 = shalt.err (!%p349_p3)
}
  0x60   :  { %217 = dma.vmem_to_hbm [thread:$0]  %s212_s29, 256, %s559_s4, [#allocation10], %s407_s30, %s407_s30, %s408_s6  }
  0x61   :  { %s353_s18 = scalar_lea.vmem %s200_s8, 256  ;;  %p358_p5 = scmp.lt.s32.totalorder %s200_s8, %s200_s8 }
  0x62   :  { %p354_p4 = scmp.ne.s32.totalorder %s200_s8, %s353_s18  ;;  %p359_p6 = scmp.lt.s32.totalorder %s353_s18, %s353_s18 }
  0x64   :  { %p360_p7 = por %p359_p6, %p358_p5 }
  0x66   :  { %p361_p8 = pnand %p360_p7, %p354_p4 }
  0x68   :  { %364 = shalt.err (!%p361_p8)
}
  0x69   :  { %s365_s22 = scalar_lea.hbm %s558_s3, 256 }
  0x6a   :  { %p366_p9 = scmp.ne.s32.totalorder %s558_s3, %s365_s22  ;;  %p369_p10 = scmp.lt.u32.totalorder %s365_s22, %s558_s3 }
  0x6c   :  { %p371_p11 = pnand %p369_p10, %p366_p9 }
  0x6e   :  { %374 = shalt.err (!%p371_p11)
}
  0x6f   :  { %205 = dma.vmem_to_hbm [thread:$0]  %s200_s8, 256, %s558_s3, [#allocation4], %s407_s30, %s407_s30, %s408_s6   ;;  %v173_v25 = vlaneseq }
  0x70   :  { %s412_s21 = smov [#allocation11]  }
  0x71   :  { %v174_v26 = vshrl.u32 %v173_v25, 7  ;;  %s224_s2 = sshll.u32 %s412_s21, 4  ;;  %s225_s2 = int_to_ptr.vmem [resolvable:$true] %s224_s2 }
  0x72   :  { %s375_s7 = scalar_lea.vmem %s225_s2, 128  ;;  %p380_p13 = scmp.lt.s32.totalorder %s225_s2, %s225_s2 }
  0x73   :  { %vm175_vm10 = vcmp.eq.s32.totalorder %v174_v26, 0  ;;  %vm178_vm11 = vcmp.eq.s32.totalorder %v174_v26, 1  ;;  %vm181_vm12 = vcmp.eq.s32.totalorder %v174_v26, 2  ;;  %vm184_vm13 = vcmp.eq.s32.totalorder %v174_v26, 3  ;;  %p376_p12 = scmp.ne.s32.totalorder %s225_s2, %s375_s7  ;;  %p381_p0 = scmp.lt.s32.totalorder %s375_s7, %s375_s7 }
  0x74   :  { %vm187_vm14 = vcmp.eq.s32.totalorder %v174_v26, 4  ;;  %vm190_vm15 = vcmp.eq.s32.totalorder %v174_v26, 5 }
  0x75   :  { %p382_p1 = por %p381_p0, %p380_p13 }
  0x77   :  { %p383_p2 = pnand %p382_p1, %p376_p12 }
  0xcf   :  { %v109_v47 = vpop.xlane.xlu0 %108 }
  0xd0   :  { %v110_v48 = vrot.slane %v109_v47, 4 }
  0xd2   :  { %v111_v49 = vadd.f32 %v110_v48, %v109_v47  ;;  %v125_v51 = vpop.xlane.xlu1 %124 }
  0xd3   :  { %v97_v50 = vpop.xlane.xlu0 %96  ;;  %v126_v54 = vrot.slane %v125_v51, 4 }
  0xd4   :  { %v112_v52 = vrot.slane %v111_v49, 2  ;;  %v98_v53 = vrot.slane %v97_v50, 4 }
  0xd5   :  { %v127_v56 = vadd.f32 %v126_v54, %v125_v51 }
  0xd6   :  { %v99_v55 = vadd.f32 %v98_v53, %v97_v50  ;;  %v113_v57 = vadd.f32 %v112_v52, %v111_v49 }
  0xd7   :  { %v153_v58 = vpop.xlane.xlu0 %152  ;;  %v128_v60 = vrot.slane %v127_v56, 2 }
  0xd8   :  { %v100_v59 = vrot.slane %v99_v55, 2  ;;  %v114_v61 = vrot.slane %v113_v57, 1  ;;  %v154_v62 = vrot.slane %v153_v58, 4 }
  0xd9   :  { %v129_v0 = vadd.f32 %v128_v60, %v127_v56 }
  0xda   :  { %v101_v63 = vadd.f32 %v100_v59, %v99_v55  ;;  %v115_v3 = vadd.f32 %v114_v61, %v113_v57  ;;  %v155_v4 = vadd.f32 %v154_v62, %v153_v58 }
  0xdb   :  { %v130_v2 = vrot.slane %v129_v0, 1 }
  0xdc   :  { %v102_v1 = vrot.slane %v101_v63, 1  ;;  %v156_v7 = vrot.slane %v155_v4, 2 }
  0xdd   :  { %v131_v6 = vadd.f32 %v130_v2, %v129_v0 }
  0xde   :  { %v103_v5 = vadd.f32 %v102_v1, %v101_v63  ;;  %v157_v11 = vadd.f32 %v156_v7, %v155_v4 }
  0xe0   :  { %245 = vpush %v103_v5  ;;  %v158_v17 = vrot.slane %v157_v11, 1 }
  0xe1   :  { %247 = vpush %v115_v3  ;;  %v141_v8 = vpop.xlane.xlu1 %140 }
  0xe2   :  { %249 = vpush %v131_v6  ;;  %v142_v9 = vrot.slane %v141_v8, 4  ;;  %v159_v22 = vadd.f32 %v158_v17, %v157_v11 }
  0xe4   :  { %v143_v10 = vadd.f32 %v142_v9, %v141_v8 }
  0xe5   :  { %v165_v12 = vpop.xlane.xlu1 %164 }
  0xe6   :  { %v144_v13 = vrot.slane %v143_v10, 2  ;;  %v166_v14 = vrot.slane %v165_v12, 4 }
  0xe8   :  { %v167_v15 = vadd.f32 %v166_v14, %v165_v12  ;;  %v145_v16 = vadd.f32 %v144_v13, %v143_v10 }
  0xea   :  { %v168_v18 = vrot.slane %v167_v15, 2  ;;  %v146_v19 = vrot.slane %v145_v16, 1 }
  0xec   :  { %v169_v20 = vadd.f32 %v168_v18, %v167_v15  ;;  %v147_v21 = vadd.f32 %v146_v19, %v145_v16 }
  0xee   :  { %251 = vpush %v147_v21  ;;  %v170_v23 = vrot.slane %v169_v20, 1 }
  0xef   :  { %253 = vpush %v159_v22 }
  0xf0   :  { %v171_v24 = vadd.f32 %v170_v23, %v169_v20 }
  0xf2   :  { %255 = vpush %v171_v24 }
 0x111   :  { %s246_s3 = spop %245 }
 0x112   :  { %v176_v27 = vstv %s246_s3  ;;  %s248_s30 = spop %247 }
 0x113   :  { %v177_v28 = vsel %vm175_vm10, %v176_v27, 0.0  ;;  %v179_v29 = vstv %s248_s30  ;;  %s250_s6 = spop %249 }
 0x114   :  { %v180_v30 = vsel %vm178_vm11, %v179_v29, %v177_v28  ;;  %v182_v31 = vstv %s250_s6 }
 0x115   :  { %v183_v32 = vsel %vm181_vm12, %v182_v31, %v180_v30 }
 0x11f   :  { %s252_s28 = spop %251 }
 0x120   :  { %v185_v33 = vstv %s252_s28  ;;  %s254_s0 = spop %253 }
 0x121   :  { %v186_v34 = vsel %vm184_vm13, %v185_v33, %v183_v32  ;;  %v188_v35 = vstv %s254_s0 }
 0x122   :  { %v189_v36 = vsel %vm187_vm14, %v188_v35, %v186_v34 }
 0x123   :  { %s256_s29 = spop %255 }
 0x124   :  { %v191_v37 = vstv %s256_s29 }
 0x125   :  { %v192_v38 = vsel %vm190_vm15, %v191_v37, %v189_v36 }
 0x126   :  { %193 = vst [vmem:[#allocation11] sm:$0xff] %v192_v38 }
 0x127   :  { %386 = shalt.err (!%p383_p2)
}
 0x128   :  { %s387_s10 = scalar_lea.hbm %s560_s5, 128 }
 0x129   :  { %p388_p3 = scmp.ne.s32.totalorder %s560_s5, %s387_s10  ;;  %p391_p4 = scmp.lt.u32.totalorder %s387_s10, %s560_s5 }
 0x12b   :  { %p393_p5 = pnand %p391_p4, %p388_p3 }
 0x12d   :  { %396 = shalt.err (!%p393_p5)
}
 0x12e   :  { %227 = dma.vmem_to_hbm [thread:$0]  %s225_s2, 128, %s560_s5, [#allocation10]  }
 0x12f   :  { %401 = dma.done.wait [#allocation4], 256  }
 0x130   :  { %402 = vsyncadd [#allocation4], 4294967040 }
 0x131   :  { %403 = dma.done.wait [#allocation10], 384  }
 0x132   :  { %404 = vsyncadd [#allocation10], 4294966912 }
 0x133   :  { %237 = vsyncpa [#allocation3], 1 }
 0x134   :  { %238 = vsyncpa [#allocation6], 1 }
 0x135   :  { %239 = vsyncpa [#allocation4], 1 }
 0x136   :  { %240 = vsyncpa [#allocation10], 1 }

</bundles_post_ra>
